<compile_context>
chip_gen: v7x
topology: tpu7x:2x2x1
jax: 0.10.0
libtpu: 0.0.40
codegen_flags: <defaults>
</compile_context>

<pallas_src>
import functools

import jax
import jax.numpy as jnp
from jax import lax
from jax.experimental import pallas as pl
from jax.experimental.pallas import tpu as pltpu

LANES = 128
SUBLANES = 8
CHUNK_ROWS = 512            # inner strip-mine tile: bounds live VMEM temporaries


def _dice_kernel(x_ref, t_ref, o_ref, acc_i_ref, acc_d_ref, *,
                 n_valid, blocks_per_core, num_blocks, block_elems,
                 chunk_rows, n_chunks, needs_tail_mask, has_duplicates):
    i = pl.program_id(1)                       # reduction axis ("arbitrary")
    blk = pl.program_id(0) * blocks_per_core + i

    @pl.when(i == 0)
    def _init():
        acc_i_ref[...] = jnp.zeros_like(acc_i_ref)
        acc_d_ref[...] = jnp.zeros_like(acc_d_ref)

    def chunk_accumulate(r0, mask_tail):
        x = x_ref[pl.ds(r0, chunk_rows), :].astype(jnp.float32)
        t = t_ref[pl.ds(r0, chunk_rows), :].astype(jnp.float32)
        # Exact sigmoid via tanh: one EUP transcendental + 2 muls + 1 add.
        p = 0.5 * (jnp.tanh(x * 0.5) + 1.0)
        if mask_tail:
            # Only the last real block carries invalid elements (host lane pad
            # + Pallas partial-block pad).  Compare per-block offsets against
            # the remaining valid count: int32-safe (rem < block_elems ~ 1M).
            rem = n_valid - (num_blocks - 1) * block_elems     # Python int
            ridx = lax.broadcasted_iota(jnp.int32, p.shape, 0)
            lidx = lax.broadcasted_iota(jnp.int32, p.shape, 1)
            valid = (r0 * LANES + ridx * LANES + lidx) < rem
            p = jnp.where(valid, p, 0.0)
            t = jnp.where(valid, t, 0.0)
        # Fold (chunk_rows,128) -> (8,128): leading-axis sum = pure vreg adds.
        acc_i_ref[...] += (p * t).reshape(
            chunk_rows // SUBLANES, SUBLANES, LANES).sum(axis=0)
        acc_d_ref[...] += (p + t).reshape(
            chunk_rows // SUBLANES, SUBLANES, LANES).sum(axis=0)

    def accumulate_block(mask_tail):
        if n_chunks == 1:
            chunk_accumulate(0, mask_tail)
        else:
            def body(ci, carry):
                r0 = pl.multiple_of(ci * chunk_rows, chunk_rows)
                chunk_accumulate(r0, mask_tail)
                return carry
            lax.fori_loop(0, n_chunks, body, 0, unroll=True)

    if needs_tail_mask or has_duplicates:
        last_blk = num_blocks - 1

        @pl.when(blk < last_blk)
        def _steady():
            accumulate_block(False)          # steady state: no mask at all

        @pl.when(blk == last_blk)
        def _last():
            accumulate_block(needs_tail_mask)
        # blk > last_blk: clamped duplicate block -> skip accumulation entirely.
    else:
        accumulate_block(False)

    @pl.when(i == pl.num_programs(1) - 1)
    def _finalize():
        # Lane-dense (8,128) partials; cross-lane reduce happens in the wrapper.
        o_ref[0, 0] = acc_i_ref[...]
        o_ref[0, 1] = acc_d_ref[...]


def _hw_config():
    """(row-tile cap, tensorcores-per-device) from the device kind."""
    try:
        kind = jax.devices()[0].device_kind.lower()
    except Exception:
        kind = ""
    is_v7 = ("v7" in kind) or ("7x" in kind)
    is_v6 = ("v6" in kind) or ("trillium" in kind)
    # 8192x128 f32 double-buffered (16 MiB) fits v6e/v7x 32 MiB scoped VMEM;
    # v5e's scoped default is 16 MiB, so cap at 4096 there (and on older/unknown).
    tr_max = 8192 if (is_v6 or is_v7) else 4096
    cores = 2 if is_v7 else 1
    return tr_max, cores


def dice_loss(inputs, targets, smooth=1.0):
    """Pallas implementation of DiceLoss.forward. Returns a scalar f32."""
    n = int(inputs.size)
    x = jnp.ravel(inputs)        # keep original dtype; cast happens in VMEM
    t = jnp.ravel(targets)

    # Pad to a multiple of 8*128 elements so every block dim is (8,128)-aligned.
    # Pad elements are masked out inside the kernel (last-block-only mask).
    elems_align = SUBLANES * LANES
    n_pad = pl.cdiv(n, elems_align) * elems_align
    if n_pad != n:
        x = jnp.pad(x, (0, n_pad - n))
        t = jnp.pad(t, (0, n_pad - n))
    rows = n_pad // LANES                       # multiple of 8
    x2 = x.reshape(rows, LANES)
    t2 = t.reshape(rows, LANES)

    tr_max, cores_avail = _hw_config()
    if rows <= CHUNK_ROWS:
        tr = rows                               # whole array in one block
    else:
        tr = min(tr_max, pl.cdiv(rows, CHUNK_ROWS) * CHUNK_ROWS)  # multiple of CHUNK
    chunk_rows = min(CHUNK_ROWS, tr)
    n_chunks = tr // chunk_rows
    block_elems = tr * LANES

    num_blocks = pl.cdiv(rows, tr)
    num_cores = min(cores_avail, num_blocks)
    bpc = pl.cdiv(num_blocks, num_cores)        # blocks per core
    needs_tail_mask = (num_blocks * block_elems) != n
    has_duplicates = (num_cores * bpc) != num_blocks

    def in_map(c, i):
        # Clamp so a core that ran out of real blocks re-reads the last block;
        # the kernel skips accumulation for those duplicates.
        return (jnp.minimum(c * bpc + i, num_blocks - 1), 0)

    kernel = functools.partial(
        _dice_kernel,
        n_valid=n, blocks_per_core=bpc, num_blocks=num_blocks,
        block_elems=block_elems, chunk_rows=chunk_rows, n_chunks=n_chunks,
        needs_tail_mask=needs_tail_mask, has_duplicates=has_duplicates)

    # Real cross-TensorCore sharding only on multi-TC chips (v7x).
    core_parallel = getattr(pltpu, "CORE_PARALLEL", "parallel")
    sem0 = core_parallel if num_cores > 1 else "parallel"

    cost = pl.CostEstimate(
        flops=7 * n,
        transcendentals=n,                       # one tanh per element
        bytes_accessed=n * (x2.dtype.itemsize + t2.dtype.itemsize)
                       + num_cores * 2 * SUBLANES * LANES * 4)

    out = pl.pallas_call(
        kernel,
        out_shape=jax.ShapeDtypeStruct((num_cores, 2, SUBLANES, LANES),
                                       jnp.float32),
        grid_spec=pltpu.PrefetchScalarGridSpec(
            num_scalar_prefetch=0,
            grid=(num_cores, bpc),
            in_specs=[
                pl.BlockSpec((tr, LANES), in_map),
                pl.BlockSpec((tr, LANES), in_map),
            ],
            out_specs=pl.BlockSpec((1, 2, SUBLANES, LANES),
                                   lambda c, i: (c, 0, 0, 0)),
            scratch_shapes=[
                pltpu.VMEM((SUBLANES, LANES), jnp.float32),   # intersection
                pltpu.VMEM((SUBLANES, LANES), jnp.float32),   # sum(p)+sum(t)
            ],
        ),
        compiler_params=pltpu.CompilerParams(
            dimension_semantics=(sem0, "arbitrary"),
        ),
        cost_estimate=cost,
    )(x2, t2)

    inter = jnp.sum(out[:, 0])
    den = jnp.sum(out[:, 1])
    dice = (2.0 * inter + smooth) / (den + smooth)
    return 1.0 - dice


def _ref_dice_loss(inputs, targets, smooth=1.0):
    p = jax.nn.sigmoid(inputs.astype(jnp.float32)).ravel()
    t = targets.astype(jnp.float32).ravel()
    inter = jnp.sum(p * t)
    dice = (2.0 * inter + smooth) / (jnp.sum(p) + jnp.sum(t) + smooth)
    return 1.0 - dice


if __name__ == "__main__":
    key = jax.random.PRNGKey(0)
    k1, k2 = jax.random.split(key)
    # NCHW, matching the PyTorch module's typical segmentation usage.
    x = jax.random.normal(k1, (2, 4, 16, 16), dtype=jnp.float32)
    tgt = (jax.random.uniform(k2, (2, 4, 16, 16)) > 0.5).astype(jnp.float32)

    loss = jax.block_until_ready(dice_loss(x, tgt))
    ref = jax.block_until_ready(_ref_dice_loss(x, tgt))
    assert jnp.allclose(loss, ref, atol=1e-5, rtol=1e-5), (loss, ref)
    print("KERNEL_OK")
</pallas_src>

<mosaic_0001>
module attributes {stable_mosaic.version = 11 : i64} {
  func.func @_dice_kernel(%arg0: i32, %arg1: i32, %arg2: memref<16x128xf32, #tpu.memory_space<vmem>>, %arg3: memref<16x128xf32, #tpu.memory_space<vmem>>, %arg4: memref<1x2x8x128xf32, #tpu.memory_space<vmem>>, %arg5: memref<8x128xf32, #tpu.memory_space<vmem>>, %arg6: memref<8x128xf32, #tpu.memory_space<vmem>>) attributes {dimension_semantics = [#tpu.dimension_semantics<parallel>, #tpu.dimension_semantics<arbitrary>], iteration_bounds = array<i64: 1, 1>, scalar_prefetch = 0 : i64, scratch_operands = 2 : i64, tpu.core_type = #tpu.core_type<tc>, window_params = [{transform_indices = @transform_0, window_bounds = array<i64: 16, 128>}, {transform_indices = @transform_1, window_bounds = array<i64: 16, 128>}, {transform_indices = @transform_2, window_bounds = array<i64: 1, 2, 8, 128>}]} {
    %c0_i32 = arith.constant 0 : i32
    %0 = arith.cmpi eq, %arg1, %c0_i32 : i32
    %1 = arith.extui %0 : i1 to i32
    %c0_i32_0 = arith.constant 0 : i32
    %2 = arith.cmpi ne, %1, %c0_i32_0 : i32
    scf.if %2 {
      %cst_18 = arith.constant 0.000000e+00 : f32
      %27 = vector.broadcast %cst_18 : f32 to vector<8x128xf32>
      %c0_19 = arith.constant 0 : index
      %c0_20 = arith.constant 0 : index
      %28 = vector.load %arg5[%c0_19, %c0_20] : memref<8x128xf32, #tpu.memory_space<vmem>>, vector<8x128xf32>
      tpu.vector_store %arg5[%c0_19, %c0_20], %27 {strides = array<i32>} : memref<8x128xf32, #tpu.memory_space<vmem>>, vector<8x128xf32>,
      %cst_21 = arith.constant 0.000000e+00 : f32
      %29 = vector.broadcast %cst_21 : f32 to vector<8x128xf32>
      %c0_22 = arith.constant 0 : index
      %c0_23 = arith.constant 0 : index
      %30 = vector.load %arg6[%c0_22, %c0_23] : memref<8x128xf32, #tpu.memory_space<vmem>>, vector<8x128xf32>
      tpu.vector_store %arg6[%c0_22, %c0_23], %29 {strides = array<i32>} : memref<8x128xf32, #tpu.memory_space<vmem>>, vector<8x128xf32>,
    } else {
    }
    %c0 = arith.constant 0 : index
    %c0_1 = arith.constant 0 : index
    %3 = vector.load %arg2[%c0, %c0_1] : memref<16x128xf32, #tpu.memory_space<vmem>>, vector<16x128xf32>
    %c0_2 = arith.constant 0 : index
    %c0_3 = arith.constant 0 : index
    %4 = vector.load %arg3[%c0_2, %c0_3] : memref<16x128xf32, #tpu.memory_space<vmem>>, vector<16x128xf32>
    %cst = arith.constant 5.000000e-01 : f32
    %5 = vector.broadcast %cst : f32 to vector<16x128xf32>
    %6 = arith.mulf %3, %5 : vector<16x128xf32>
    %7 = math.tanh %6 : vector<16x128xf32>
    %cst_4 = arith.constant 1.000000e+00 : f32
    %8 = vector.broadcast %cst_4 : f32 to vector<16x128xf32>
    %9 = arith.addf %7, %8 : vector<16x128xf32>
    %cst_5 = arith.constant 5.000000e-01 : f32
    %10 = vector.broadcast %cst_5 : f32 to vector<16x128xf32>
    %11 = arith.mulf %10, %9 : vector<16x128xf32>
    %c0_6 = arith.constant 0 : index
    %c0_7 = arith.constant 0 : index
    %12 = vector.load %arg5[%c0_6, %c0_7] : memref<8x128xf32, #tpu.memory_space<vmem>>, vector<8x128xf32>
    %13 = arith.mulf %11, %4 : vector<16x128xf32>
    %14 = vector.shape_cast %13 : vector<16x128xf32> to vector<2x8x128xf32>
    %cst_8 = arith.constant dense<0.000000e+00> : vector<8x128xf32>
    %15 = vector.multi_reduction <add>, %14, %cst_8 [0] : vector<2x8x128xf32> to vector<8x128xf32>
    %16 = arith.addf %12, %15 : vector<8x128xf32>
    %c0_9 = arith.constant 0 : index
    %c0_10 = arith.constant 0 : index
    %17 = vector.load %arg5[%c0_9, %c0_10] : memref<8x128xf32, #tpu.memory_space<vmem>>, vector<8x128xf32>
    tpu.vector_store %arg5[%c0_9, %c0_10], %16 {strides = array<i32>} : memref<8x128xf32, #tpu.memory_space<vmem>>, vector<8x128xf32>,
    %c0_11 = arith.constant 0 : index
    %c0_12 = arith.constant 0 : index
    %18 = vector.load %arg6[%c0_11, %c0_12] : memref<8x128xf32, #tpu.memory_space<vmem>>, vector<8x128xf32>
    %19 = arith.addf %11, %4 : vector<16x128xf32>
    %20 = vector.shape_cast %19 : vector<16x128xf32> to vector<2x8x128xf32>
    %cst_13 = arith.constant dense<0.000000e+00> : vector<8x128xf32>
    %21 = vector.multi_reduction <add>, %20, %cst_13 [0] : vector<2x8x128xf32> to vector<8x128xf32>
    %22 = arith.addf %18, %21 : vector<8x128xf32>
    %c0_14 = arith.constant 0 : index
    %c0_15 = arith.constant 0 : index
    %23 = vector.load %arg6[%c0_14, %c0_15] : memref<8x128xf32, #tpu.memory_space<vmem>>, vector<8x128xf32>
    tpu.vector_store %arg6[%c0_14, %c0_15], %22 {strides = array<i32>} : memref<8x128xf32, #tpu.memory_space<vmem>>, vector<8x128xf32>,
    %c0_i32_16 = arith.constant 0 : i32
    %24 = arith.cmpi eq, %arg1, %c0_i32_16 : i32
    %25 = arith.extui %24 : i1 to i32
    %c0_i32_17 = arith.constant 0 : i32
    %26 = arith.cmpi ne, %25, %c0_i32_17 : i32
    scf.if %26 {
      %c0_18 = arith.constant 0 : index
      %c0_19 = arith.constant 0 : index
      %27 = vector.load %arg5[%c0_18, %c0_19] : memref<8x128xf32, #tpu.memory_space<vmem>>, vector<8x128xf32>
      %c0_20 = arith.constant 0 : index
      %c0_21 = arith.constant 0 : index
      %c0_22 = arith.constant 0 : index
      %c0_23 = arith.constant 0 : index
      %28 = vector.load %arg4[%c0_20, %c0_21, %c0_22, %c0_23] : memref<1x2x8x128xf32, #tpu.memory_space<vmem>>, vector<1x1x8x128xf32>
      %29 = vector.shape_cast %28 : vector<1x1x8x128xf32> to vector<8x128xf32>
      %30 = vector.shape_cast %27 : vector<8x128xf32> to vector<1x1x8x128xf32>
      tpu.vector_store %arg4[%c0_20, %c0_21, %c0_22, %c0_23], %30 {strides = array<i32>} : memref<1x2x8x128xf32, #tpu.memory_space<vmem>>, vector<1x1x8x128xf32>,
      %c0_24 = arith.constant 0 : index
      %c0_25 = arith.constant 0 : index
      %31 = vector.load %arg6[%c0_24, %c0_25] : memref<8x128xf32, #tpu.memory_space<vmem>>, vector<8x128xf32>
      %c0_26 = arith.constant 0 : index
      %c1 = arith.constant 1 : index
      %c0_27 = arith.constant 0 : index
      %c0_28 = arith.constant 0 : index
      %32 = vector.load %arg4[%c0_26, %c1, %c0_27, %c0_28] : memref<1x2x8x128xf32, #tpu.memory_space<vmem>>, vector<1x1x8x128xf32>
      %33 = vector.shape_cast %32 : vector<1x1x8x128xf32> to vector<8x128xf32>
      %34 = vector.shape_cast %31 : vector<8x128xf32> to vector<1x1x8x128xf32>
      tpu.vector_store %arg4[%c0_26, %c1, %c0_27, %c0_28], %34 {strides = array<i32>} : memref<1x2x8x128xf32, #tpu.memory_space<vmem>>, vector<1x1x8x128xf32>,
    } else {
    }
    return
  }
  func.func @transform_0(%arg0: i32, %arg1: i32) -> (i32, i32) {
    %c1_i32 = arith.constant 1 : i32
    %0 = arith.muli %arg0, %c1_i32 : i32
    %1 = arith.addi %0, %arg1 : i32
    %c0_i32 = arith.constant 0 : i32
    %2 = arith.minsi %1, %c0_i32 : i32
    %c0_i32_0 = arith.constant 0 : i32
    %c0_i32_1 = arith.constant 0 : i32
    return %2, %c0_i32_0 : i32, i32
  }
  func.func @transform_1(%arg0: i32, %arg1: i32) -> (i32, i32) {
    %c1_i32 = arith.constant 1 : i32
    %0 = arith.muli %arg0, %c1_i32 : i32
    %1 = arith.addi %0, %arg1 : i32
    %c0_i32 = arith.constant 0 : i32
    %2 = arith.minsi %1, %c0_i32 : i32
    %c0_i32_0 = arith.constant 0 : i32
    %c0_i32_1 = arith.constant 0 : i32
    return %2, %c0_i32_0 : i32, i32
  }
  func.func @transform_2(%arg0: i32, %arg1: i32) -> (i32, i32, i32, i32) {
    %c0_i32 = arith.constant 0 : i32
    %c0_i32_0 = arith.constant 0 : i32
    %c0_i32_1 = arith.constant 0 : i32
    %c0_i32_2 = arith.constant 0 : i32
    return %arg0, %c0_i32, %c0_i32_0, %c0_i32_1 : i32, i32, i32, i32
  }
}

</mosaic_0001>

<bundles_post_ra>
// kernel: tpu_custom_call.1
= control target key start
LH: loop header
LB: loop body
LE: loop exit
PB: predicated region body
PF: predicated region fallthrough
CT: control target
= control target key end

     0   :  { %7 = vsyncpa [#allocation5], 0  ;;  %s266_s0 = inlined_call_operand.hbm [shape: f32[16,128], index: 0, kind: input, shape index: {}]   ;;  %s267_s1 = inlined_call_operand.hbm [shape: f32[16,128], index: 1, kind: input, shape index: {}]   ;;  %s268_s2 = inlined_call_operand.hbm [shape: f32[1,2,8,128], index: 2, kind: output, shape index: {}]  }
   0x1   :  { %8 = vsyncpa [#allocation8], 0 }
   0x2   :  { %9 = vsyncpa [#allocation6], 0  ;;  %s201_s9 = smov [#allocation4]   ;;  %s129_s13 = scalar_lea.hbm %s266_s0, 256 }
   0x3   :  { %s21_s10 = sshll.u32 %s201_s9, 4  ;;  %p130_p0 = scmp.ne.s32.totalorder %s266_s0, %s129_s13  ;;  %s22_s10 = int_to_ptr.vmem [resolvable:$true] %s21_s10 }
   0x4   :  { %p133_p1 = scmp.lt.u32.totalorder %s129_s13, %s266_s0 }
   0x6   :  { %p135_p2 = pnand %p133_p1, %p130_p0 }
   0x8   :  { %138 = shalt.err (!%p135_p2)
}
   0x9   :  { %s139_s18 = scalar_lea.vmem %s22_s10, 256  ;;  %p144_p4 = scmp.lt.s32.totalorder %s22_s10, %s22_s10 }
   0xa   :  { %p140_p3 = scmp.ne.s32.totalorder %s22_s10, %s139_s18  ;;  %p145_p5 = scmp.lt.s32.totalorder %s139_s18, %s139_s18 }
   0xc   :  { %p146_p6 = por %p145_p5, %p144_p4 }
   0xe   :  { %p147_p7 = pnand %p146_p6, %p140_p3 }
  0x10   :  { %150 = shalt.err (!%p147_p7)
}
  0x11   :  { %s202_s19 = smov 128   ;;  %s203_s20 = smov 8  }
  0x12   :  { %27 = dma.hbm_to_vmem [thread:$0]  %s266_s0, 256, %s22_s10, [#allocation5], %s202_s19, %s202_s19, %s203_s20  }
  0x13   :  { %s204_s23 = smov [#allocation7]   ;;  %s151_s27 = scalar_lea.hbm %s267_s1, 256 }
  0x14   :  { %s39_s24 = sshll.u32 %s204_s23, 4  ;;  %p152_p8 = scmp.ne.s32.totalorder %s267_s1, %s151_s27  ;;  %s40_s24 = int_to_ptr.vmem [resolvable:$true] %s39_s24 }
  0x15   :  { %p155_p9 = scmp.lt.u32.totalorder %s151_s27, %s267_s1 }
  0x17   :  { %p157_p10 = pnand %p155_p9, %p152_p8 }
  0x19   :  { %160 = shalt.err (!%p157_p10)
}
  0x1a   :  { %s161_s4 = scalar_lea.vmem %s40_s24, 256  ;;  %p166_p12 = scmp.lt.s32.totalorder %s40_s24, %s40_s24 }
  0x1b   :  { %p162_p11 = scmp.ne.s32.totalorder %s40_s24, %s161_s4  ;;  %p167_p13 = scmp.lt.s32.totalorder %s161_s4, %s161_s4 }
  0x1d   :  { %p168_p0 = por %p167_p13, %p166_p12 }
  0x1f   :  { %p169_p1 = pnand %p168_p0, %p162_p11 }
  0x21   :  { %172 = shalt.err (!%p169_p1)
}
  0x22   :  { %45 = dma.hbm_to_vmem [thread:$0]  %s267_s1, 256, %s40_s24, [#allocation8], %s202_s19, %s202_s19, %s203_s20  }
  0x23   :  { %195 = dma.done.wait [#allocation5], 256  }
  0x24   :  { %196 = vsyncadd [#allocation5], 4294967040 }
  0x25   :  { %197 = dma.done.wait [#allocation8], 256  }
  0x26   :  { %198 = vsyncadd [#allocation8], 4294967040  ;;  %v66_v0 = vld [vmem:[#allocation4] sm:$0xff]  ;;  %v67_v1 = vld [vmem:[#allocation4 + $0x8] sm:$0xff]  ;;  %s205_s1 = smov [#allocation9]  }
  0x27   :  { %v70_v2 = vmul.f32 0.5, %v66_v0  ;;  %v71_v3 = vmul.f32 0.5, %v67_v1  ;;  %v68_v7 = vld [vmem:[#allocation7] sm:$0xff]  ;;  %v69_v9 = vld [vmem:[#allocation7 + $0x8] sm:$0xff]  ;;  %s103_s6 = sshll.u32 %s205_s1, 4  ;;  %s104_s6 = int_to_ptr.vmem [resolvable:$true] %s103_s6 }
  0x28   :  { %s173_s7 = scalar_lea.vmem %s104_s6, 256  ;;  %p178_p3 = scmp.lt.s32.totalorder %s104_s6, %s104_s6 }
  0x29   :  { %125 = vtanh.f32 %v70_v2  ;;  %p174_p2 = scmp.ne.s32.totalorder %s104_s6, %s173_s7  ;;  %p179_p4 = scmp.lt.s32.totalorder %s173_s7, %s173_s7 }
  0x2a   :  { %127 = vtanh.f32 %v71_v3 }
  0x2b   :  { %p180_p5 = por %p179_p4, %p178_p3 }
  0x2d   :  { %p181_p6 = pnand %p180_p5, %p174_p2 }
  0x33   :  { %v126_v4 = vpop.eup %125 }
  0x34   :  { %v128_v5 = vpop.eup %127  ;;  %v74_v6 = vadd.f32 1.0, %v126_v4 }
  0x35   :  { %v75_v8 = vadd.f32 1.0, %v128_v5 }
  0x36   :  { %v76_v10 = vmul.f32 0.5, %v74_v6 }
  0x37   :  { %v77_v11 = vmul.f32 0.5, %v75_v8 }
  0x38   :  { %v79_v12 = vmul.f32 %v76_v10, %v68_v7  ;;  %v85_v13 = vadd.f32 %v76_v10, %v68_v7 }
  0x39   :  { %v80_v14 = vmul.f32 %v77_v11, %v69_v9  ;;  %v86_v15 = vadd.f32 %v77_v11, %v69_v9 }
  0x3b   :  { %v81_v16 = vadd.f32 %v80_v14, %v79_v12  ;;  %v87_v17 = vadd.f32 %v86_v15, %v85_v13 }
  0x3d   :  { %94 = vst [vmem:[#allocation9] sm:$0xff] %v81_v16  ;;  %97 = vst [vmem:[#allocation9 + $0x8] sm:$0xff] %v87_v17 }
  0x3e   :  { %184 = shalt.err (!%p181_p6)
}
  0x3f   :  { %s185_s10 = scalar_lea.hbm %s268_s2, 256 }
  0x40   :  { %p186_p7 = scmp.ne.s32.totalorder %s268_s2, %s185_s10  ;;  %p189_p8 = scmp.lt.u32.totalorder %s185_s10, %s268_s2 }
  0x42   :  { %p191_p9 = pnand %p189_p8, %p186_p7 }
  0x44   :  { %194 = shalt.err (!%p191_p9)
}
  0x45   :  { %109 = dma.vmem_to_hbm [thread:$0]  %s104_s6, 256, %s268_s2, [#allocation6], %s202_s19, %s202_s19, %s203_s20  }
  0x46   :  { %199 = dma.done.wait [#allocation6], 256  }
  0x47   :  { %200 = vsyncadd [#allocation6], 4294967040 }
  0x48   :  { %113 = vsyncpa [#allocation5], 1 }
  0x49   :  { %114 = vsyncpa [#allocation8], 1 }
  0x4a   :  { %115 = vsyncpa [#allocation6], 1 }

</bundles_post_ra>
